<compile_context>
chip_gen: v7x
topology: tpu7x:2x2x1
jax: 0.10.0
libtpu: 0.0.40
codegen_flags: <defaults>
</compile_context>

<pallas_src>
import functools

import jax
import jax.numpy as jnp
from jax.experimental import pallas as pl
from jax.experimental.pallas import tpu as pltpu

_F32 = jnp.float32
_LANES = 128            # lane-dense last dim
_MAX_BLOCK_ROWS = 1024  # biggest tile that comfortably fits VMEM (~0.5 MiB/buffer)
_PAD_PRED = -100.0      # padding logit: with target 0 it yields exactly 0 focal loss


def _round_up(a, b):
    return (a + b - 1) // b * b


def _pow(x, g):
    # x >= 0 here (x = 1 - p_t with p_t in [0, 1]).
    if g == 1.0:
        return x
    if g == 1.5:
        return x * jnp.sqrt(x)       # EUP sqrt + one VALU mul
    if g == 2.0:
        return x * x
    return jnp.exp(g * jnp.log(jnp.maximum(x, 1e-30)))


def _focal_elementwise(x, t, gamma, alpha):
    """Elementwise focal loss, identical math to the PyTorch forward."""
    # BCEWithLogitsLoss(reduction='none'):  max(x,0) - x*t + log(1 + exp(-|x|))
    bce = jnp.maximum(x, 0.0) - x * t + jnp.log(1.0 + jnp.exp(-jnp.abs(x)))
    # sigmoid via EUP exp + EUP reciprocal
    pred_prob = pl.reciprocal(1.0 + jnp.exp(-x), approx=False)
    p_t = t * pred_prob + (1.0 - t) * (1.0 - pred_prob)
    alpha_factor = t * alpha + (1.0 - t) * (1.0 - alpha)
    modulating = _pow(1.0 - p_t, gamma)
    return bce * alpha_factor * modulating


def _focal_sum_kernel(pred_ref, true_ref, out_ref, *, gamma, alpha):
    """Per grid step: (TM, 128) tile -> (1, 128) per-lane partial sums."""
    loss = _focal_elementwise(pred_ref[...], true_ref[...], gamma, alpha)
    # Sublane reduction only; the tiny cross-lane reduce happens in plain JAX.
    out_ref[0] = jnp.sum(loss, axis=0, keepdims=True)


def _focal_none_kernel(pred_ref, true_ref, out_ref, *, gamma, alpha):
    out_ref[...] = _focal_elementwise(pred_ref[...], true_ref[...], gamma, alpha)


def _flatten_pad(pred, true):
    """Flatten to lane-dense (rows, 128) f32 with zero-loss padding."""
    n = pred.size
    rows = _round_up(max(1, -(-n // _LANES)), 8)
    tm = min(rows, _MAX_BLOCK_ROWS)
    rows = _round_up(rows, tm)
    grid = rows // tm
    pad = rows * _LANES - n
    p = jnp.ravel(pred).astype(_F32)
    t = jnp.ravel(true).astype(_F32)
    if pad:
        p = jnp.concatenate([p, jnp.full((pad,), _PAD_PRED, _F32)])
        t = jnp.concatenate([t, jnp.zeros((pad,), _F32)])
    return p.reshape(rows, _LANES), t.reshape(rows, _LANES), tm, grid, n


def focal_loss(pred, true, gamma=1.5, alpha=0.25, reduction='mean'):
    p2, t2, tm, grid, n = _flatten_pad(pred, true)
    in_specs = [pl.BlockSpec((tm, _LANES), lambda i: (i, 0)),
                pl.BlockSpec((tm, _LANES), lambda i: (i, 0))]
    cparams = pltpu.CompilerParams(dimension_semantics=("parallel",))

    if reduction in ('mean', 'sum'):
        partials = pl.pallas_call(
            functools.partial(_focal_sum_kernel, gamma=gamma, alpha=alpha),
            out_shape=jax.ShapeDtypeStruct((grid, 1, _LANES), _F32),
            grid=(grid,),
            in_specs=in_specs,
            out_specs=pl.BlockSpec((1, 1, _LANES), lambda i: (i, 0, 0)),
            compiler_params=cparams,
        )(p2, t2)
        total = jnp.sum(partials)
        if reduction == 'mean':
            return total * (1.0 / float(n))
        return total

    # reduction == 'none': elementwise output (padded rows are sliced away)
    out = pl.pallas_call(
        functools.partial(_focal_none_kernel, gamma=gamma, alpha=alpha),
        out_shape=jax.ShapeDtypeStruct((p2.shape[0], _LANES), _F32),
        grid=(grid,),
        in_specs=in_specs,
        out_specs=pl.BlockSpec((tm, _LANES), lambda i: (i, 0)),
        compiler_params=cparams,
    )(p2, t2)
    return out.reshape(-1)[:n].reshape(pred.shape)


class FocalLossPallas:
    """JAX/Pallas port of FocalLoss(nn.BCEWithLogitsLoss(reduction=reduction), gamma, alpha).

    `reduction` is the reduction of the wrapped BCEWithLogitsLoss (default 'mean'),
    which FocalLoss captures in __init__ and applies at the end of forward.
    """
    # TODO(synk): arbitrary `loss_fcn` callables are not supported; only the standard
    # BCEWithLogitsLoss usage (the YOLO case) is implemented in-kernel.

    def __init__(self, gamma=1.5, alpha=0.25, reduction='mean'):
        self.gamma = float(gamma)
        self.alpha = float(alpha)
        self.reduction = reduction

    def __call__(self, pred, true):
        return focal_loss(pred, true, self.gamma, self.alpha, self.reduction)


# ---------------- pure-JAX reference (mirrors the PyTorch math) ----------------
def _ref_focal_loss(pred, true, gamma=1.5, alpha=0.25, reduction='mean'):
    pred = pred.astype(_F32)
    true = true.astype(_F32)
    bce = jnp.maximum(pred, 0.0) - pred * true + jnp.log(1.0 + jnp.exp(-jnp.abs(pred)))
    p = jax.nn.sigmoid(pred)
    p_t = true * p + (1.0 - true) * (1.0 - p)
    alpha_factor = true * alpha + (1.0 - true) * (1.0 - alpha)
    modulating = jnp.power(1.0 - p_t, gamma)
    loss = bce * alpha_factor * modulating
    if reduction == 'mean':
        return loss.mean()
    if reduction == 'sum':
        return loss.sum()
    return loss


if __name__ == "__main__":
    key = jax.random.PRNGKey(0)

    def make_inputs(k, shape):
        kp, kt = jax.random.split(k)
        pred = 2.0 * jax.random.normal(kp, shape, _F32)          # logits
        true = (jax.random.uniform(kt, shape) < 0.3).astype(_F32)  # binary targets
        return pred, true

    ok = True

    # 1) small 4D map, all reductions
    pred, true = make_inputs(jax.random.fold_in(key, 1), (2, 4, 16, 16))
    fl_mean = FocalLossPallas(reduction='mean')
    fl_sum = FocalLossPallas(reduction='sum')
    fl_none = FocalLossPallas(reduction='none')

    out_mean = jax.block_until_ready(fl_mean(pred, true))
    out_sum = jax.block_until_ready(fl_sum(pred, true))
    out_none = jax.block_until_ready(fl_none(pred, true))

    ok &= bool(jnp.allclose(out_mean, _ref_focal_loss(pred, true, 1.5, 0.25, 'mean'),
                            rtol=1e-4, atol=1e-6))
    ok &= bool(jnp.allclose(out_sum, _ref_focal_loss(pred, true, 1.5, 0.25, 'sum'),
                            rtol=1e-4, atol=1e-5))
    ref_none = _ref_focal_loss(pred, true, 1.5, 0.25, 'none')
    ok &= out_none.shape == pred.shape
    ok &= bool(jnp.allclose(out_none, ref_none, rtol=1e-4, atol=1e-5))

    # 2) larger input exercising a multi-step parallel grid
    pred2, true2 = make_inputs(jax.random.fold_in(key, 2), (8, 32, 32, 32))
    out2 = jax.block_until_ready(fl_mean(pred2, true2))
    ok &= bool(jnp.allclose(out2, _ref_focal_loss(pred2, true2, 1.5, 0.25, 'mean'),
                            rtol=1e-4, atol=1e-6))

    # 3) odd (non-128-divisible) size exercising the zero-loss padding path
    pred3, true3 = make_inputs(jax.random.fold_in(key, 3), (2, 3, 7, 9))
    out3m = jax.block_until_ready(fl_mean(pred3, true3))
    out3n = jax.block_until_ready(fl_none(pred3, true3))
    ok &= bool(jnp.allclose(out3m, _ref_focal_loss(pred3, true3, 1.5, 0.25, 'mean'),
                            rtol=1e-4, atol=1e-6))
    ok &= bool(jnp.allclose(out3n, _ref_focal_loss(pred3, true3, 1.5, 0.25, 'none'),
                            rtol=1e-4, atol=1e-5))

    assert ok, "focal-loss Pallas kernel does not match the reference"
    print("KERNEL_OK")
</pallas_src>

<mosaic_0001>
module attributes {stable_mosaic.version = 11 : i64} {
  func.func @_focal_sum_kernel(%arg0: i32, %arg1: memref<16x128xf32, #tpu.memory_space<vmem>>, %arg2: memref<16x128xf32, #tpu.memory_space<vmem>>, %arg3: memref<1x1x128xf32, #tpu.memory_space<vmem>>) attributes {dimension_semantics = [#tpu.dimension_semantics<parallel>], iteration_bounds = array<i64: 1>, scalar_prefetch = 0 : i64, scratch_operands = 0 : i64, tpu.core_type = #tpu.core_type<tc>, window_params = [{transform_indices = @transform_0, window_bounds = array<i64: 16, 128>}, {transform_indices = @transform_1, window_bounds = array<i64: 16, 128>}, {transform_indices = @transform_2, window_bounds = array<i64: 1, 1, 128>}]} {
    %c0 = arith.constant 0 : index
    %c0_0 = arith.constant 0 : index
    %0 = vector.load %arg1[%c0, %c0_0] : memref<16x128xf32, #tpu.memory_space<vmem>>, vector<16x128xf32>
    %c0_1 = arith.constant 0 : index
    %c0_2 = arith.constant 0 : index
    %1 = vector.load %arg2[%c0_1, %c0_2] : memref<16x128xf32, #tpu.memory_space<vmem>>, vector<16x128xf32>
    %cst = arith.constant 0.000000e+00 : f32
    %2 = vector.broadcast %cst : f32 to vector<16x128xf32>
    %3 = arith.maximumf %0, %2 : vector<16x128xf32>
    %4 = arith.mulf %0, %1 : vector<16x128xf32>
    %5 = arith.subf %3, %4 : vector<16x128xf32>
    %6 = math.absf %0 : vector<16x128xf32>
    %cst_3 = arith.constant 0.000000e+00 : f32
    %7 = vector.broadcast %cst_3 : f32 to vector<16x128xf32>
    %8 = arith.subf %7, %6 : vector<16x128xf32>
    %9 = math.exp %8 : vector<16x128xf32>
    %cst_4 = arith.constant 1.000000e+00 : f32
    %10 = vector.broadcast %cst_4 : f32 to vector<16x128xf32>
    %11 = arith.addf %10, %9 : vector<16x128xf32>
    %12 = math.log %11 : vector<16x128xf32>
    %13 = arith.addf %5, %12 : vector<16x128xf32>
    %cst_5 = arith.constant 0.000000e+00 : f32
    %14 = vector.broadcast %cst_5 : f32 to vector<16x128xf32>
    %15 = arith.subf %14, %0 : vector<16x128xf32>
    %16 = math.exp %15 : vector<16x128xf32>
    %cst_6 = arith.constant 1.000000e+00 : f32
    %17 = vector.broadcast %cst_6 : f32 to vector<16x128xf32>
    %18 = arith.addf %17, %16 : vector<16x128xf32>
    %19 = tpu.reciprocal %18 : vector<16x128xf32> -> vector<16x128xf32>
    %20 = arith.mulf %1, %19 : vector<16x128xf32>
    %cst_7 = arith.constant 1.000000e+00 : f32
    %21 = vector.broadcast %cst_7 : f32 to vector<16x128xf32>
    %22 = arith.subf %21, %1 : vector<16x128xf32>
    %cst_8 = arith.constant 1.000000e+00 : f32
    %23 = vector.broadcast %cst_8 : f32 to vector<16x128xf32>
    %24 = arith.subf %23, %19 : vector<16x128xf32>
    %25 = arith.mulf %22, %24 : vector<16x128xf32>
    %26 = arith.addf %20, %25 : vector<16x128xf32>
    %cst_9 = arith.constant 2.500000e-01 : f32
    %27 = vector.broadcast %cst_9 : f32 to vector<16x128xf32>
    %28 = arith.mulf %1, %27 : vector<16x128xf32>
    %cst_10 = arith.constant 1.000000e+00 : f32
    %29 = vector.broadcast %cst_10 : f32 to vector<16x128xf32>
    %30 = arith.subf %29, %1 : vector<16x128xf32>
    %cst_11 = arith.constant 7.500000e-01 : f32
    %31 = vector.broadcast %cst_11 : f32 to vector<16x128xf32>
    %32 = arith.mulf %30, %31 : vector<16x128xf32>
    %33 = arith.addf %28, %32 : vector<16x128xf32>
    %cst_12 = arith.constant 1.000000e+00 : f32
    %34 = vector.broadcast %cst_12 : f32 to vector<16x128xf32>
    %35 = arith.subf %34, %26 : vector<16x128xf32>
    %36 = math.sqrt %35 : vector<16x128xf32>
    %37 = arith.mulf %35, %36 : vector<16x128xf32>
    %38 = arith.mulf %13, %33 : vector<16x128xf32>
    %39 = arith.mulf %38, %37 : vector<16x128xf32>
    %cst_13 = arith.constant dense<0.000000e+00> : vector<128xf32>
    %40 = vector.multi_reduction <add>, %39, %cst_13 [0] : vector<16x128xf32> to vector<128xf32>
    %41 = vector.shape_cast %40 : vector<128xf32> to vector<1x128xf32>
    %c0_14 = arith.constant 0 : index
    %c0_15 = arith.constant 0 : index
    %c0_16 = arith.constant 0 : index
    %42 = vector.load %arg3[%c0_14, %c0_15, %c0_16] : memref<1x1x128xf32, #tpu.memory_space<vmem>>, vector<1x1x128xf32>
    %43 = vector.shape_cast %42 : vector<1x1x128xf32> to vector<1x128xf32>
    %44 = vector.shape_cast %41 : vector<1x128xf32> to vector<1x1x128xf32>
    tpu.vector_store %arg3[%c0_14, %c0_15, %c0_16], %44 {strides = array<i32>} : memref<1x1x128xf32, #tpu.memory_space<vmem>>, vector<1x1x128xf32>,
    return
  }
  func.func @transform_0(%arg0: i32) -> (i32, i32) {
    %c0_i32 = arith.constant 0 : i32
    %c0_i32_0 = arith.constant 0 : i32
    return %arg0, %c0_i32 : i32, i32
  }
  func.func @transform_1(%arg0: i32) -> (i32, i32) {
    %c0_i32 = arith.constant 0 : i32
    %c0_i32_0 = arith.constant 0 : i32
    return %arg0, %c0_i32 : i32, i32
  }
  func.func @transform_2(%arg0: i32) -> (i32, i32, i32) {
    %c0_i32 = arith.constant 0 : i32
    %c0_i32_0 = arith.constant 0 : i32
    %c0_i32_1 = arith.constant 0 : i32
    return %arg0, %c0_i32, %c0_i32_0 : i32, i32, i32
  }
}

</mosaic_0001>

<bundles_post_ra>
// kernel: tpu_custom_call.1
= control target key start
LH: loop header
LB: loop body
LE: loop exit
PB: predicated region body
PF: predicated region fallthrough
CT: control target
= control target key end

     0   :  { %7 = vsyncpa [#allocation3], 0  ;;  %s291_s0 = inlined_call_operand.hbm [shape: f32[16,128], index: 0, kind: input, shape index: {}]   ;;  %s292_s1 = inlined_call_operand.hbm [shape: f32[16,128], index: 1, kind: input, shape index: {}]   ;;  %s293_s2 = inlined_call_operand.hbm [shape: f32[1,1,128], index: 2, kind: output, shape index: {}]  }
   0x1   :  { %8 = vsyncpa [#allocation6], 0 }
   0x2   :  { %9 = vsyncpa [#allocation4], 0  ;;  %s235_s9 = smov [#allocation2]   ;;  %s163_s13 = scalar_lea.hbm %s291_s0, 256 }
   0x3   :  { %s15_s10 = sshll.u32 %s235_s9, 4  ;;  %p164_p0 = scmp.ne.s32.totalorder %s291_s0, %s163_s13  ;;  %s16_s10 = int_to_ptr.vmem [resolvable:$true] %s15_s10 }
   0x4   :  { %p167_p1 = scmp.lt.u32.totalorder %s163_s13, %s291_s0 }
   0x6   :  { %p169_p2 = pnand %p167_p1, %p164_p0 }
   0x8   :  { %172 = shalt.err (!%p169_p2)
}
   0x9   :  { %s173_s18 = scalar_lea.vmem %s16_s10, 256  ;;  %p178_p4 = scmp.lt.s32.totalorder %s16_s10, %s16_s10 }
   0xa   :  { %p174_p3 = scmp.ne.s32.totalorder %s16_s10, %s173_s18  ;;  %p179_p5 = scmp.lt.s32.totalorder %s173_s18, %s173_s18 }
   0xc   :  { %p180_p6 = por %p179_p5, %p178_p4 }
   0xe   :  { %p181_p7 = pnand %p180_p6, %p174_p3 }
  0x10   :  { %184 = shalt.err (!%p181_p7)
}
  0x11   :  { %s236_s19 = smov 128   ;;  %s237_s20 = smov 8  }
  0x12   :  { %21 = dma.hbm_to_vmem [thread:$0]  %s291_s0, 256, %s16_s10, [#allocation3], %s236_s19, %s236_s19, %s237_s20  }
  0x13   :  { %s238_s23 = smov [#allocation5]   ;;  %s185_s27 = scalar_lea.hbm %s292_s1, 256 }
  0x14   :  { %s27_s24 = sshll.u32 %s238_s23, 4  ;;  %p186_p8 = scmp.ne.s32.totalorder %s292_s1, %s185_s27  ;;  %s28_s24 = int_to_ptr.vmem [resolvable:$true] %s27_s24 }
  0x15   :  { %p189_p9 = scmp.lt.u32.totalorder %s185_s27, %s292_s1 }
  0x17   :  { %p191_p10 = pnand %p189_p9, %p186_p8 }
  0x19   :  { %194 = shalt.err (!%p191_p10)
}
  0x1a   :  { %s195_s4 = scalar_lea.vmem %s28_s24, 256  ;;  %p200_p12 = scmp.lt.s32.totalorder %s28_s24, %s28_s24 }
  0x1b   :  { %p196_p11 = scmp.ne.s32.totalorder %s28_s24, %s195_s4  ;;  %p201_p13 = scmp.lt.s32.totalorder %s195_s4, %s195_s4 }
  0x1d   :  { %p202_p0 = por %p201_p13, %p200_p12 }
  0x1f   :  { %p203_p1 = pnand %p202_p0, %p196_p11 }
  0x21   :  { %206 = shalt.err (!%p203_p1)
}
  0x22   :  { %33 = dma.hbm_to_vmem [thread:$0]  %s292_s1, 256, %s28_s24, [#allocation6], %s236_s19, %s236_s19, %s237_s20  }
  0x23   :  { %229 = dma.done.wait [#allocation3], 256  }
  0x24   :  { %230 = vsyncadd [#allocation3], 4294967040 }
  0x25   :  { %231 = dma.done.wait [#allocation6], 256  }
  0x26   :  { %232 = vsyncadd [#allocation6], 4294967040  ;;  %v40_v0 = vld [vmem:[#allocation2] sm:$0xff]  ;;  %v41_v1 = vld [vmem:[#allocation2 + $0x8] sm:$0xff]  ;;  %s239_s1 = smov [#allocation7]  }
  0x27   :  { %v50_v2 = vand.u32 2147483647, %v40_v0  ;;  %v66_v3 = vsub.f32 0.0, %v40_v0  ;;  %v67_v4 = vsub.f32 0.0, %v41_v1  ;;  %v51_v5 = vand.u32 2147483647, %v41_v1 }
  0x28   :  { %v42_v17 = vld [vmem:[#allocation5] sm:$0xff]  ;;  %v43_v20 = vld [vmem:[#allocation5 + $0x8] sm:$0xff]  ;;  %v44_v36 = vmax.f32 %v40_v0, 0.0  ;;  %v45_v39 = vmax.f32 %v41_v1, 0.0  ;;  %s128_s6 = sshll.u32 %s239_s1, 4  ;;  %s129_s6 = int_to_ptr.vmem [resolvable:$true] %s128_s6 }
  0x29   :  { %v68_v6 = vmul.f32 1.442695, %v66_v3  ;;  %v70_v7 = vmul.f32 1.442695, %v67_v4  ;;  %v52_v8 = vsub.f32 0.0, %v50_v2  ;;  %v53_v9 = vsub.f32 0.0, %v51_v5  ;;  %p212_p3 = scmp.lt.s32.totalorder %s129_s6, %s129_s6 }
  0x2a   :  { %v78_v21 = vsub.f32 1.0, %v42_v17  ;;  %v79_v26 = vsub.f32 1.0, %v43_v20  ;;  %v46_v37 = vmul.f32 %v42_v17, %v40_v0  ;;  %v47_v40 = vmul.f32 %v43_v20, %v41_v1  ;;  %s207_s7 = scalar_lea.vmem %s129_s6, 16  ;;  %s211_s8 = scalar_lea.vmem %s129_s6, 32 }
  0x2b   :  { %143 = vpow2.f32 %v68_v6  ;;  %v54_v10 = vmul.f32 1.442695, %v52_v8  ;;  %v56_v11 = vmul.f32 1.442695, %v53_v9  ;;  %v86_v44 = vmul.f32 0.25, %v42_v17  ;;  %p208_p2 = scmp.ne.s32.totalorder %s129_s6, %s207_s7  ;;  %p213_p4 = scmp.lt.s32.totalorder %s211_s8, %s207_s7 }
  0x2c   :  { %145 = vpow2.f32 %v70_v7  ;;  %v48_v42 = vsub.f32 %v44_v36, %v46_v37  ;;  %v88_v45 = vmul.f32 0.75, %v78_v21  ;;  %v49_v46 = vsub.f32 %v45_v39, %v47_v40 }
  0x2d   :  { %147 = vpow2.f32 %v54_v10  ;;  %v87_v48 = vmul.f32 0.25, %v43_v20  ;;  %v89_v49 = vmul.f32 0.75, %v79_v26  ;;  %p214_p5 = por %p213_p4, %p212_p3 }
  0x2e   :  { %149 = vpow2.f32 %v56_v11  ;;  %v90_v52 = vadd.f32 %v88_v45, %v86_v44 }
  0x2f   :  { %v91_v56 = vadd.f32 %v89_v49, %v87_v48  ;;  %p215_p6 = pnand %p214_p5, %p208_p2 }
  0x35   :  { %v144_v12 = vpop.eup %143 }
  0x36   :  { %v72_v13 = vadd.f32 1.0, %v144_v12  ;;  %v146_v14 = vpop.eup %145 }
  0x37   :  { %v73_v15 = vadd.f32 1.0, %v146_v14  ;;  %v148_v16 = vpop.eup %147 }
  0x38   :  { %151 = vrcp.f32 %v72_v13  ;;  %v150_v18 = vpop.eup %149  ;;  %v58_v19 = vadd.f32 1.0, %v148_v16 }
  0x39   :  { %153 = vrcp.f32 %v73_v15  ;;  %v59_v23 = vadd.f32 1.0, %v150_v18 }
  0x3a   :  { %155 = vlog2.f32 %v58_v19 }
  0x3b   :  { %157 = vlog2.f32 %v59_v23 }
  0x42   :  { %v152_v22 = vpop.eup %151 }
  0x43   :  { %v76_v24 = vmul.f32 %v152_v22, %v42_v17  ;;  %v80_v25 = vsub.f32 1.0, %v152_v22  ;;  %v154_v27 = vpop.eup %153 }
  0x44   :  { %v77_v29 = vmul.f32 %v154_v27, %v43_v20  ;;  %v81_v30 = vsub.f32 1.0, %v154_v27  ;;  %v156_v38 = vpop.eup %155 }
  0x45   :  { %v82_v28 = vmul.f32 %v80_v25, %v78_v21  ;;  %v158_v41 = vpop.eup %157  ;;  %v61_v43 = vmul.f32 0.6931472, %v156_v38 }
  0x46   :  { %v83_v32 = vmul.f32 %v81_v30, %v79_v26  ;;  %v63_v47 = vmul.f32 0.6931472, %v158_v41 }
  0x47   :  { %v84_v31 = vadd.f32 %v82_v28, %v76_v24  ;;  %v64_v51 = vadd.f32 %v61_v43, %v48_v42 }
  0x48   :  { %v85_v34 = vadd.f32 %v83_v32, %v77_v29  ;;  %v65_v55 = vadd.f32 %v63_v47, %v49_v46 }
  0x49   :  { %v92_v33 = vsub.f32 1.0, %v84_v31  ;;  %v110_v62 = vmul.f32 %v90_v52, %v64_v51 }
  0x4a   :  { %v93_v35 = vsub.f32 1.0, %v85_v34  ;;  %v111_v1 = vmul.f32 %v91_v56, %v65_v55 }
  0x4b   :  { %159 = vrsqrt.f32 %v92_v33  ;;  %vm96_vm0 = vcmp.eq.f32.partialorder %v92_v33, inf  ;;  %v99_v53 = vand.u32 2147483648, %v92_v33  ;;  %vm98_vm1 = vcmp.eq.f32.partialorder %v92_v33, 0.0 }
  0x4c   :  { %161 = vrsqrt.f32 %v93_v35  ;;  %vm103_vm2 = vcmp.eq.f32.partialorder %v93_v35, inf  ;;  %v106_v59 = vand.u32 2147483648, %v93_v35  ;;  %vm105_vm3 = vcmp.eq.f32.partialorder %v93_v35, 0.0 }
  0x55   :  { %v160_v50 = vpop.eup %159 }
  0x56   :  { %v95_v54 = vmul.f32 %v160_v50, %v92_v33  ;;  %v162_v57 = vpop.eup %161 }
  0x57   :  { %v102_v61 = vmul.f32 %v162_v57, %v93_v35 }
  0x58   :  { %v97_v58 = vsel %vm96_vm0, %v92_v33, %v95_v54 }
  0x59   :  { %v100_v60 = vsel %vm98_vm1, %v99_v53, %v97_v58  ;;  %v104_v0 = vsel %vm103_vm2, %v93_v35, %v102_v61 }
  0x5a   :  { %v108_v63 = vmul.f32 %v100_v60, %v92_v33  ;;  %v107_v2 = vsel %vm105_vm3, %v106_v59, %v104_v0 }
  0x5b   :  { %v109_v3 = vmul.f32 %v107_v2, %v93_v35 }
  0x5c   :  { %v112_v4 = vmul.f32 %v110_v62, %v108_v63 }
  0x5d   :  { %v113_v5 = vmul.f32 %v111_v1, %v109_v3 }
  0x5f   :  { %v114_v6 = vadd.f32 %v113_v5, %v112_v4 }
  0x61   :  { %v115_v7 = vrot.slane %v114_v6, 4 }
  0x63   :  { %v116_v8 = vadd.f32 %v115_v7, %v114_v6 }
  0x65   :  { %v117_v9 = vrot.slane %v116_v8, 2 }
  0x67   :  { %v118_v10 = vadd.f32 %v117_v9, %v116_v8 }
  0x69   :  { %v119_v11 = vrot.slane %v118_v10, 1 }
  0x6b   :  { %v120_v12 = vadd.f32 %v119_v11, %v118_v10 }
  0x6d   :  { %121 = vst [vmem:[#allocation7] sm:$0x1] %v120_v12 }
  0x6e   :  { %218 = shalt.err (!%p215_p6)
}
  0x6f   :  { %s219_s11 = scalar_lea.hbm %s293_s2, 16 }
  0x70   :  { %p220_p7 = scmp.ne.s32.totalorder %s293_s2, %s219_s11  ;;  %p223_p8 = scmp.lt.u32.totalorder %s219_s11, %s293_s2 }
  0x72   :  { %p225_p9 = pnand %p223_p8, %p220_p7 }
  0x74   :  { %228 = shalt.err (!%p225_p9)
}
  0x75   :  { %131 = dma.vmem_to_hbm [thread:$0]  %s129_s6, 16, %s293_s2, [#allocation4]  }
  0x76   :  { %233 = dma.done.wait [#allocation4], 16  }
  0x77   :  { %234 = vsyncadd [#allocation4], 4294967280 }
  0x78   :  { %135 = vsyncpa [#allocation3], 1 }
  0x79   :  { %136 = vsyncpa [#allocation6], 1 }
  0x7a   :  { %137 = vsyncpa [#allocation4], 1 }

</bundles_post_ra>
